<compile_context>
chip_gen: v5e
topology: v5e:2x2
jax: 0.10.0
libtpu: 0.0.40
codegen_flags: <defaults>
</compile_context>

<pallas_src>
import functools

import jax
import jax.numpy as jnp
from jax.experimental import pallas as pl
from jax.experimental.pallas import tpu as pltpu

HIDDEN = 128   # nn.Linear(dim, 128) / nn.Linear(128, 128) / nn.Linear(128, dim)
SUBLANE = 8


def _round_up(x, m):
    return ((x + m - 1) // m) * m


def make_cnf_rk4_kernel(dt):
    """Build a kernel with dt (and RK4 coefficients) constant-folded."""
    dt = float(dt)
    c_third = dt / 3.0
    c_eighth = dt * 0.125

    def kernel(z_ref, w1_ref, b1_ref, w2_ref, b2_ref, w31_ref, b31_ref,
               w3_ref, b3_ref, out_ref):
        w1 = w1_ref[...]     # (dim, H)  f32  -- first layer kept f32 for accuracy
        b1 = b1_ref[...]     # (1, H)    f32
        w2 = w2_ref[...]     # (H, H)    bf16
        b2 = b2_ref[...]     # (1, H)    f32
        w31 = w31_ref[...]   # (H, H)    bf16  == W3 @ W1 (precomputed in f32)
        b31 = b31_ref[...]   # (1, H)    f32   == b3 @ W1
        w3 = w3_ref[...]     # (H, dim)  bf16
        b3 = b3_ref[...]     # (1, dim)  f32

        z0 = z_ref[...].astype(jnp.float32)              # (bm, dim)

        # First-layer pre-activation of the base point, computed once (f32 dot;
        # K = dim is tiny so the f32 MXU passes are negligible).
        u0 = jnp.dot(z0, w1, preferred_element_type=jnp.float32) + b1

        def hidden(u):
            # first-layer pre-activation -> second hidden h2 (bm, H), f32.
            h1 = jnp.tanh(u)
            return jnp.tanh(
                jnp.dot(h1.astype(jnp.bfloat16), w2,
                        preferred_element_type=jnp.float32) + b2)

        def reentry(h2):
            # v_i = k_i @ W1 = h2_i @ (W3@W1) + b3@W1 -- stays in hidden space,
            # so k_i is never materialized as a (bm, dim) tensor.
            return jnp.dot(h2.astype(jnp.bfloat16), w31,
                           preferred_element_type=jnp.float32) + b31

        # RK4 3/8-rule (torchdiffeq rk4_alt_step_func), stages carried entirely
        # in the 128-wide hidden space:
        #   u(a) = a @ W1 + b1,  a2 = z0 + dt/3*k1,  a3 = z0 + dt*k2 - dt/3*k1,
        #   a4 = z0 + dt*(k1 - k2 + k3)   =>   u(a_j) = u0 + dt * combo(v_i).
        h2_1 = hidden(u0)
        v1 = reentry(h2_1)
        h2_2 = hidden(u0 + c_third * v1)
        v2 = reentry(h2_2)
        h2_3 = hidden(u0 + dt * v2 - c_third * v1)
        v3 = reentry(h2_3)
        h2_4 = hidden(u0 + dt * (v1 - v2 + v3))

        # z1 = z0 + dt/8 * (k1 + 3*(k2+k3) + k4)
        #    = z0 + dt/8 * (H @ W3) + dt * b3,  H = h2_1 + 3*(h2_2+h2_3) + h2_4
        hsum = h2_1 + 3.0 * (h2_2 + h2_3) + h2_4
        z1 = (z0
              + c_eighth * jnp.dot(hsum.astype(jnp.bfloat16), w3,
                                   preferred_element_type=jnp.float32)
              + dt * b3)
        out_ref[...] = z1.astype(out_ref.dtype)

    return kernel


@functools.partial(jax.jit, static_argnames=("t", "bm"))
def cnf_forward(z0, params, t=(0.0, 1.0), bm=1024):
    """CNF.forward: single RK4 (3/8-rule) step from t[0] to t[1]. z0: (B, dim)."""
    w1, b1, w2, b2, w3, b3 = params
    B, dim = z0.shape
    dt = float(t[1]) - float(t[0])

    # Batch tile: aim for >= ~4 grid steps (so v7x's 2 TensorCores both get
    # work under the "parallel" axis), cap at bm rows per tile, keep a multiple
    # of 8 sublanes.  pl.cdiv grid => partial last block is masked by Pallas.
    bm_eff = _round_up(max(1, pl.cdiv(B, 4)), SUBLANE)
    bm_eff = max(SUBLANE, min(bm_eff, int(bm)))
    grid = pl.cdiv(B, bm_eff)

    # One-time wrapper-side precompute (tiny): fused re-entry operator in f32,
    # bf16 weight casts.
    w1f = w1.astype(jnp.float32)                          # (dim, H) stays f32
    w3f = w3.astype(jnp.float32)                          # (H, dim)
    w2b = w2.astype(jnp.bfloat16)                         # (H, H)
    w31 = (w3f @ w1f).astype(jnp.bfloat16)                # (H, H) = W3 @ W1
    w3b = w3f.astype(jnp.bfloat16)
    b1f = b1.astype(jnp.float32).reshape(1, HIDDEN)
    b2f = b2.astype(jnp.float32).reshape(1, HIDDEN)
    b3f = b3.astype(jnp.float32).reshape(1, dim)
    b31 = b3f @ w1f                                       # (1, H) f32 = b3 @ W1

    out = pl.pallas_call(
        make_cnf_rk4_kernel(dt),
        out_shape=jax.ShapeDtypeStruct((B, dim), z0.dtype),
        grid=(grid,),
        in_specs=[
            pl.BlockSpec((bm_eff, dim), lambda i: (i, 0)),     # z0 tile
            pl.BlockSpec((dim, HIDDEN), lambda i: (0, 0)),     # W1 (f32)
            pl.BlockSpec((1, HIDDEN), lambda i: (0, 0)),       # b1
            pl.BlockSpec((HIDDEN, HIDDEN), lambda i: (0, 0)),  # W2 (bf16)
            pl.BlockSpec((1, HIDDEN), lambda i: (0, 0)),       # b2
            pl.BlockSpec((HIDDEN, HIDDEN), lambda i: (0, 0)),  # W31 = W3@W1 (bf16)
            pl.BlockSpec((1, HIDDEN), lambda i: (0, 0)),       # b31 = b3@W1
            pl.BlockSpec((HIDDEN, dim), lambda i: (0, 0)),     # W3 (bf16)
            pl.BlockSpec((1, dim), lambda i: (0, 0)),          # b3
        ],
        out_specs=pl.BlockSpec((bm_eff, dim), lambda i: (i, 0)),
        compiler_params=pltpu.CompilerParams(
            dimension_semantics=("parallel",)),
    )(z0, w1f, b1f, w2b, b2f, w31, b31, w3b, b3f)

    return out


def cnf_inverse(z1, params, t=(1.0, 0.0), bm=1024):
    """CNF.inverse: same single RK4 step with reversed time interval."""
    return cnf_forward(z1, params, t=t, bm=bm)


def init_params(key, dim):
    """Deterministic init matching ODEFunc.__init__: weights ~ N(0, 0.01), biases 0.

    Stored as (in_features, out_features) so each linear is `y = x @ W + b`.
    """
    k1, k2, k3 = jax.random.split(key, 3)
    w1 = 0.01 * jax.random.normal(k1, (dim, HIDDEN), dtype=jnp.float32)
    w2 = 0.01 * jax.random.normal(k2, (HIDDEN, HIDDEN), dtype=jnp.float32)
    w3 = 0.01 * jax.random.normal(k3, (HIDDEN, dim), dtype=jnp.float32)
    b1 = jnp.zeros((1, HIDDEN), jnp.float32)
    b2 = jnp.zeros((1, HIDDEN), jnp.float32)
    b3 = jnp.zeros((1, dim), jnp.float32)
    return (w1, b1, w2, b2, w3, b3)


def cnf_forward_ref(z0, params, t=(0.0, 1.0)):
    """Plain-JAX f32 reference (unfused original math) for correctness checking."""
    w1, b1, w2, b2, w3, b3 = params
    dt = float(t[1]) - float(t[0])

    def f(z):
        h1 = jnp.tanh(z @ w1 + b1)
        h2 = jnp.tanh(h1 @ w2 + b2)
        return h2 @ w3 + b3

    k1 = f(z0)
    k2 = f(z0 + dt * k1 / 3.0)
    k3 = f(z0 + dt * (k2 - k1 / 3.0))
    k4 = f(z0 + dt * (k1 - k2 + k3))
    return z0 + dt * (k1 + 3.0 * (k2 + k3) + k4) / 8.0


if __name__ == "__main__":
    dim = 16
    key = jax.random.PRNGKey(0)
    kp, kz1, kz2 = jax.random.split(key, 3)
    params = init_params(kp, dim)

    # Case 1: batch divisible by 8 (even grid).
    z0_a = jax.random.normal(kz1, (16, dim), dtype=jnp.float32)
    z1_a = jax.block_until_ready(cnf_forward(z0_a, params, t=(0.0, 1.0)))
    ref_a = cnf_forward_ref(z0_a, params, t=(0.0, 1.0))
    assert z1_a.shape == z0_a.shape
    # bf16 MXU inputs + fused W3@W1 re-entry (f32 accumulation / combine).
    assert jnp.allclose(z1_a, ref_a, atol=5e-4, rtol=5e-4), (
        float(jnp.max(jnp.abs(z1_a - ref_a))))

    # Case 2: ragged batch (exercises the masked partial last grid block).
    z0_b = jax.random.normal(kz2, (10, dim), dtype=jnp.float32)
    z1_b = jax.block_until_ready(cnf_forward(z0_b, params, t=(0.0, 1.0)))
    ref_b = cnf_forward_ref(z0_b, params, t=(0.0, 1.0))
    assert z1_b.shape == z0_b.shape
    assert jnp.allclose(z1_b, ref_b, atol=5e-4, rtol=5e-4), (
        float(jnp.max(jnp.abs(z1_b - ref_b))))

    print("KERNEL_OK")
</pallas_src>

<mosaic_0001>
module attributes {stable_mosaic.version = 11 : i64} {
  func.func @kernel(%arg0: i32, %arg1: memref<8x16xf32, #tpu.memory_space<vmem>>, %arg2: memref<16x128xf32, #tpu.memory_space<vmem>>, %arg3: memref<1x128xf32, #tpu.memory_space<vmem>>, %arg4: memref<128x128xbf16, #tpu.memory_space<vmem>>, %arg5: memref<1x128xf32, #tpu.memory_space<vmem>>, %arg6: memref<128x128xbf16, #tpu.memory_space<vmem>>, %arg7: memref<1x128xf32, #tpu.memory_space<vmem>>, %arg8: memref<128x16xbf16, #tpu.memory_space<vmem>>, %arg9: memref<1x16xf32, #tpu.memory_space<vmem>>, %arg10: memref<8x16xf32, #tpu.memory_space<vmem>>) attributes {dimension_semantics = [#tpu.dimension_semantics<parallel>], iteration_bounds = array<i64: 2>, scalar_prefetch = 0 : i64, scratch_operands = 0 : i64, tpu.core_type = #tpu.core_type<tc>, window_params = [{transform_indices = @transform_0, window_bounds = array<i64: 8, 16>}, {pipeline_mode = #tpu.pipeline_mode<synchronous>, transform_indices = @transform_1, window_bounds = array<i64: 16, 128>}, {pipeline_mode = #tpu.pipeline_mode<synchronous>, transform_indices = @transform_2, window_bounds = array<i64: 1, 128>}, {pipeline_mode = #tpu.pipeline_mode<synchronous>, transform_indices = @transform_3, window_bounds = array<i64: 128, 128>}, {pipeline_mode = #tpu.pipeline_mode<synchronous>, transform_indices = @transform_4, window_bounds = array<i64: 1, 128>}, {pipeline_mode = #tpu.pipeline_mode<synchronous>, transform_indices = @transform_5, window_bounds = array<i64: 128, 128>}, {pipeline_mode = #tpu.pipeline_mode<synchronous>, transform_indices = @transform_6, window_bounds = array<i64: 1, 128>}, {pipeline_mode = #tpu.pipeline_mode<synchronous>, transform_indices = @transform_7, window_bounds = array<i64: 128, 16>}, {pipeline_mode = #tpu.pipeline_mode<synchronous>, transform_indices = @transform_8, window_bounds = array<i64: 1, 16>}, {transform_indices = @transform_9, window_bounds = array<i64: 8, 16>}]} {
    %c0 = arith.constant 0 : index
    %c0_0 = arith.constant 0 : index
    %0 = vector.load %arg2[%c0, %c0_0] : memref<16x128xf32, #tpu.memory_space<vmem>>, vector<16x128xf32>
    %c0_1 = arith.constant 0 : index
    %c0_2 = arith.constant 0 : index
    %1 = vector.load %arg3[%c0_1, %c0_2] : memref<1x128xf32, #tpu.memory_space<vmem>>, vector<1x128xf32>
    %c0_3 = arith.constant 0 : index
    %c0_4 = arith.constant 0 : index
    %2 = vector.load %arg4[%c0_3, %c0_4] : memref<128x128xbf16, #tpu.memory_space<vmem>>, vector<128x128xbf16>
    %c0_5 = arith.constant 0 : index
    %c0_6 = arith.constant 0 : index
    %3 = vector.load %arg5[%c0_5, %c0_6] : memref<1x128xf32, #tpu.memory_space<vmem>>, vector<1x128xf32>
    %c0_7 = arith.constant 0 : index
    %c0_8 = arith.constant 0 : index
    %4 = vector.load %arg6[%c0_7, %c0_8] : memref<128x128xbf16, #tpu.memory_space<vmem>>, vector<128x128xbf16>
    %c0_9 = arith.constant 0 : index
    %c0_10 = arith.constant 0 : index
    %5 = vector.load %arg7[%c0_9, %c0_10] : memref<1x128xf32, #tpu.memory_space<vmem>>, vector<1x128xf32>
    %c0_11 = arith.constant 0 : index
    %c0_12 = arith.constant 0 : index
    %6 = vector.load %arg8[%c0_11, %c0_12] : memref<128x16xbf16, #tpu.memory_space<vmem>>, vector<128x16xbf16>
    %c0_13 = arith.constant 0 : index
    %c0_14 = arith.constant 0 : index
    %7 = vector.load %arg9[%c0_13, %c0_14] : memref<1x16xf32, #tpu.memory_space<vmem>>, vector<1x16xf32>
    %c0_15 = arith.constant 0 : index
    %c0_16 = arith.constant 0 : index
    %8 = vector.load %arg1[%c0_15, %c0_16] : memref<8x16xf32, #tpu.memory_space<vmem>>, vector<8x16xf32>
    %cst = arith.constant dense<0.000000e+00> : vector<8x128xf32>
    %9 = tpu.matmul %8, %0, %cst {dimension_numbers = #tpu.dot_dimension_numbers<[1], [0], [0], [1], [0, 0, 1, 1], [], []>} : vector<8x16xf32>, vector<16x128xf32>, vector<8x128xf32> -> vector<8x128xf32>
    %10 = vector.broadcast %1 : vector<1x128xf32> to vector<8x128xf32>
    %11 = arith.addf %9, %10 : vector<8x128xf32>
    %12 = math.tanh %11 : vector<8x128xf32>
    %13 = arith.truncf %12 : vector<8x128xf32> to vector<8x128xbf16>
    %cst_17 = arith.constant dense<0.000000e+00> : vector<8x128xf32>
    %14 = tpu.matmul %13, %2, %cst_17 {dimension_numbers = #tpu.dot_dimension_numbers<[1], [0], [0], [1], [0, 0, 1, 1], [], []>} : vector<8x128xbf16>, vector<128x128xbf16>, vector<8x128xf32> -> vector<8x128xf32>
    %15 = vector.broadcast %3 : vector<1x128xf32> to vector<8x128xf32>
    %16 = arith.addf %14, %15 : vector<8x128xf32>
    %17 = math.tanh %16 : vector<8x128xf32>
    %18 = arith.truncf %17 : vector<8x128xf32> to vector<8x128xbf16>
    %cst_18 = arith.constant dense<0.000000e+00> : vector<8x128xf32>
    %19 = tpu.matmul %18, %4, %cst_18 {dimension_numbers = #tpu.dot_dimension_numbers<[1], [0], [0], [1], [0, 0, 1, 1], [], []>} : vector<8x128xbf16>, vector<128x128xbf16>, vector<8x128xf32> -> vector<8x128xf32>
    %20 = vector.broadcast %5 : vector<1x128xf32> to vector<8x128xf32>
    %21 = arith.addf %19, %20 : vector<8x128xf32>
    %cst_19 = arith.constant 0.333333343 : f32
    %22 = vector.broadcast %cst_19 : f32 to vector<8x128xf32>
    %23 = arith.mulf %22, %21 : vector<8x128xf32>
    %24 = arith.addf %11, %23 : vector<8x128xf32>
    %25 = math.tanh %24 : vector<8x128xf32>
    %26 = arith.truncf %25 : vector<8x128xf32> to vector<8x128xbf16>
    %cst_20 = arith.constant dense<0.000000e+00> : vector<8x128xf32>
    %27 = tpu.matmul %26, %2, %cst_20 {dimension_numbers = #tpu.dot_dimension_numbers<[1], [0], [0], [1], [0, 0, 1, 1], [], []>} : vector<8x128xbf16>, vector<128x128xbf16>, vector<8x128xf32> -> vector<8x128xf32>
    %28 = vector.broadcast %3 : vector<1x128xf32> to vector<8x128xf32>
    %29 = arith.addf %27, %28 : vector<8x128xf32>
    %30 = math.tanh %29 : vector<8x128xf32>
    %31 = arith.truncf %30 : vector<8x128xf32> to vector<8x128xbf16>
    %cst_21 = arith.constant dense<0.000000e+00> : vector<8x128xf32>
    %32 = tpu.matmul %31, %4, %cst_21 {dimension_numbers = #tpu.dot_dimension_numbers<[1], [0], [0], [1], [0, 0, 1, 1], [], []>} : vector<8x128xbf16>, vector<128x128xbf16>, vector<8x128xf32> -> vector<8x128xf32>
    %33 = vector.broadcast %5 : vector<1x128xf32> to vector<8x128xf32>
    %34 = arith.addf %32, %33 : vector<8x128xf32>
    %cst_22 = arith.constant 1.000000e+00 : f32
    %35 = vector.broadcast %cst_22 : f32 to vector<8x128xf32>
    %36 = arith.mulf %35, %34 : vector<8x128xf32>
    %37 = arith.addf %11, %36 : vector<8x128xf32>
    %cst_23 = arith.constant 0.333333343 : f32
    %38 = vector.broadcast %cst_23 : f32 to vector<8x128xf32>
    %39 = arith.mulf %38, %21 : vector<8x128xf32>
    %40 = arith.subf %37, %39 : vector<8x128xf32>
    %41 = math.tanh %40 : vector<8x128xf32>
    %42 = arith.truncf %41 : vector<8x128xf32> to vector<8x128xbf16>
    %cst_24 = arith.constant dense<0.000000e+00> : vector<8x128xf32>
    %43 = tpu.matmul %42, %2, %cst_24 {dimension_numbers = #tpu.dot_dimension_numbers<[1], [0], [0], [1], [0, 0, 1, 1], [], []>} : vector<8x128xbf16>, vector<128x128xbf16>, vector<8x128xf32> -> vector<8x128xf32>
    %44 = vector.broadcast %3 : vector<1x128xf32> to vector<8x128xf32>
    %45 = arith.addf %43, %44 : vector<8x128xf32>
    %46 = math.tanh %45 : vector<8x128xf32>
    %47 = arith.truncf %46 : vector<8x128xf32> to vector<8x128xbf16>
    %cst_25 = arith.constant dense<0.000000e+00> : vector<8x128xf32>
    %48 = tpu.matmul %47, %4, %cst_25 {dimension_numbers = #tpu.dot_dimension_numbers<[1], [0], [0], [1], [0, 0, 1, 1], [], []>} : vector<8x128xbf16>, vector<128x128xbf16>, vector<8x128xf32> -> vector<8x128xf32>
    %49 = vector.broadcast %5 : vector<1x128xf32> to vector<8x128xf32>
    %50 = arith.addf %48, %49 : vector<8x128xf32>
    %51 = arith.subf %21, %34 : vector<8x128xf32>
    %52 = arith.addf %51, %50 : vector<8x128xf32>
    %cst_26 = arith.constant 1.000000e+00 : f32
    %53 = vector.broadcast %cst_26 : f32 to vector<8x128xf32>
    %54 = arith.mulf %53, %52 : vector<8x128xf32>
    %55 = arith.addf %11, %54 : vector<8x128xf32>
    %56 = math.tanh %55 : vector<8x128xf32>
    %57 = arith.truncf %56 : vector<8x128xf32> to vector<8x128xbf16>
    %cst_27 = arith.constant dense<0.000000e+00> : vector<8x128xf32>
    %58 = tpu.matmul %57, %2, %cst_27 {dimension_numbers = #tpu.dot_dimension_numbers<[1], [0], [0], [1], [0, 0, 1, 1], [], []>} : vector<8x128xbf16>, vector<128x128xbf16>, vector<8x128xf32> -> vector<8x128xf32>
    %59 = vector.broadcast %3 : vector<1x128xf32> to vector<8x128xf32>
    %60 = arith.addf %58, %59 : vector<8x128xf32>
    %61 = math.tanh %60 : vector<8x128xf32>
    %62 = arith.addf %30, %46 : vector<8x128xf32>
    %cst_28 = arith.constant 3.000000e+00 : f32
    %63 = vector.broadcast %cst_28 : f32 to vector<8x128xf32>
    %64 = arith.mulf %63, %62 : vector<8x128xf32>
    %65 = arith.addf %17, %64 : vector<8x128xf32>
    %66 = arith.addf %65, %61 : vector<8x128xf32>
    %67 = arith.truncf %66 : vector<8x128xf32> to vector<8x128xbf16>
    %cst_29 = arith.constant dense<0.000000e+00> : vector<8x16xf32>
    %68 = tpu.matmul %67, %6, %cst_29 {dimension_numbers = #tpu.dot_dimension_numbers<[1], [0], [0], [1], [0, 0, 1, 1], [], []>} : vector<8x128xbf16>, vector<128x16xbf16>, vector<8x16xf32> -> vector<8x16xf32>
    %cst_30 = arith.constant 1.250000e-01 : f32
    %69 = vector.broadcast %cst_30 : f32 to vector<8x16xf32>
    %70 = arith.mulf %69, %68 : vector<8x16xf32>
    %71 = arith.addf %8, %70 : vector<8x16xf32>
    %cst_31 = arith.constant 1.000000e+00 : f32
    %72 = vector.broadcast %cst_31 : f32 to vector<1x16xf32>
    %73 = arith.mulf %72, %7 : vector<1x16xf32>
    %74 = vector.broadcast %73 : vector<1x16xf32> to vector<8x16xf32>
    %75 = arith.addf %71, %74 : vector<8x16xf32>
    %c0_32 = arith.constant 0 : index
    %c0_33 = arith.constant 0 : index
    %76 = vector.load %arg10[%c0_32, %c0_33] : memref<8x16xf32, #tpu.memory_space<vmem>>, vector<8x16xf32>
    tpu.vector_store %arg10[%c0_32, %c0_33], %75 {strides = array<i32>} : memref<8x16xf32, #tpu.memory_space<vmem>>, vector<8x16xf32>,
    return
  }
  func.func @transform_0(%arg0: i32) -> (i32, i32) {
    %c0_i32 = arith.constant 0 : i32
    %c0_i32_0 = arith.constant 0 : i32
    return %arg0, %c0_i32 : i32, i32
  }
  func.func @transform_1(%arg0: i32) -> (i32, i32) {
    %c0_i32 = arith.constant 0 : i32
    %c0_i32_0 = arith.constant 0 : i32
    %c0_i32_1 = arith.constant 0 : i32
    return %c0_i32, %c0_i32_0 : i32, i32
  }
  func.func @transform_2(%arg0: i32) -> (i32, i32) {
    %c0_i32 = arith.constant 0 : i32
    %c0_i32_0 = arith.constant 0 : i32
    %c0_i32_1 = arith.constant 0 : i32
    return %c0_i32, %c0_i32_0 : i32, i32
  }
  func.func @transform_3(%arg0: i32) -> (i32, i32) {
    %c0_i32 = arith.constant 0 : i32
    %c0_i32_0 = arith.constant 0 : i32
    %c0_i32_1 = arith.constant 0 : i32
    return %c0_i32, %c0_i32_0 : i32, i32
  }
  func.func @transform_4(%arg0: i32) -> (i32, i32) {
    %c0_i32 = arith.constant 0 : i32
    %c0_i32_0 = arith.constant 0 : i32
    %c0_i32_1 = arith.constant 0 : i32
    return %c0_i32, %c0_i32_0 : i32, i32
  }
  func.func @transform_5(%arg0: i32) -> (i32, i32) {
    %c0_i32 = arith.constant 0 : i32
    %c0_i32_0 = arith.constant 0 : i32
    %c0_i32_1 = arith.constant 0 : i32
    return %c0_i32, %c0_i32_0 : i32, i32
  }
  func.func @transform_6(%arg0: i32) -> (i32, i32) {
    %c0_i32 = arith.constant 0 : i32
    %c0_i32_0 = arith.constant 0 : i32
    %c0_i32_1 = arith.constant 0 : i32
    return %c0_i32, %c0_i32_0 : i32, i32
  }
  func.func @transform_7(%arg0: i32) -> (i32, i32) {
    %c0_i32 = arith.constant 0 : i32
    %c0_i32_0 = arith.constant 0 : i32
    %c0_i32_1 = arith.constant 0 : i32
    return %c0_i32, %c0_i32_0 : i32, i32
  }
  func.func @transform_8(%arg0: i32) -> (i32, i32) {
    %c0_i32 = arith.constant 0 : i32
    %c0_i32_0 = arith.constant 0 : i32
    %c0_i32_1 = arith.constant 0 : i32
    return %c0_i32, %c0_i32_0 : i32, i32
  }
  func.func @transform_9(%arg0: i32) -> (i32, i32) {
    %c0_i32 = arith.constant 0 : i32
    %c0_i32_0 = arith.constant 0 : i32
    return %arg0, %c0_i32 : i32, i32
  }
}

</mosaic_0001>

<bundles_post_ra>
// kernel: cnf_forward.1
= control target key start
LH: loop header
LB: loop body
LE: loop exit
PB: predicated region body
PF: predicated region fallthrough
CT: control target
= control target key end

     0   :  { %14 = vsyncpa [#allocation3], 0  ;;  %s1275_s0 = inlined_call_operand.vmem [shape: f32[16,16], index: 0, kind: input, shape index: {}]   ;;  %s1276_s1 = inlined_call_operand.vmem [shape: f32[16,128], index: 1, kind: input, shape index: {}]   ;;  %s1277_s2 = inlined_call_operand.vmem [shape: f32[1,128], index: 2, kind: input, shape index: {}]   ;;  %s1278_s3 = inlined_call_operand.vmem [shape: bf16[128,128], index: 3, kind: input, shape index: {}]   ;;  %s1279_s4 = inlined_call_operand.vmem [shape: f32[1,128], index: 4, kind: input, shape index: {}]   ;;  %s1280_s5 = inlined_call_operand.vmem [shape: bf16[128,128], index: 5, kind: input, shape index: {}]   ;;  %s1281_s6 = inlined_call_operand.vmem [shape: f32[1,128], index: 6, kind: input, shape index: {}]   ;;  %s1282_s7 = inlined_call_operand.vmem [shape: bf16[128,16], index: 7, kind: input, shape index: {}]   ;;  %s1283_s8 = inlined_call_operand.vmem [shape: f32[1,16], index: 8, kind: input, shape index: {}]   ;;  %s1284_s9 = inlined_call_operand.hbm [shape: f32[16,16], index: 9, kind: output, shape index: {}]  }
   0x1   :  { %16 = vsyncpa [#allocation3 + $0x1], 0  ;;  %s1077_s30 = smov 0   ;;  %s1079_s10 = smov 0  }
   0x2   :  { %s1081_s11 = smov 0   ;;  %s1083_s12 = smov 0  }
   0x3 LB: > { %s1098_s13 = sadd.s32 4294967295, %s1025_s12   ;;  %s773_s14 = sadd.s32 4294967294, %s1025_s12   ;;  %s1025_s12 = sphi %s1083_s12, %s1290_s12   ;;  %s1021_s11 = sphi %s1081_s11, %s1289_s11   ;;  %s1017_s10 = sphi %s1079_s10, %s1288_s10   ;;  %s1013_s30 = sphi %s1077_s30, %s1287_s30  }
   0x4   : > { %s1102_s15 = sadd.s32 1, %s1025_s12   ;;  %s223_s16 = sadd.s32 1, %s1021_s11 }
   0x5   : > { %s220_s17 = ssub.s32 %s1025_s12, %s1102_s15  ;;  %p233_p0 = scmp.ne.s32.totalorder %s1021_s11, %s1017_s10 }
   0x6   : > { %p221_p1 = scmp.eq.s32.totalorder %s220_s17, 0  ;;  %p234_p2 = scmp.eq.s32.totalorder %s1098_s13, 1 }
   0x7   : > { %p239_p3 = scmp.ne.s32.totalorder %s1017_s10, %s1013_s30  ;;  %p240_p4 = scmp.eq.s32.totalorder %s773_s14, 1 }
   0x8   : > { %s1113_s18 = scalar_select %p221_p1, %s1021_s11, %s223_s16  }
   0x9   : > { %p1115_p5 = por %p234_p2, %p233_p0  ;;  %p1119_p6 = por %p240_p4, %p239_p3 }
   0xa   : > { %p776_p7 = scmp.ge.s32.totalorder %s1025_s12, 1  ;;  %p289_p8 = scmp.lt.s32.totalorder %s1025_s12, 3 }
   0xc   : > { %p290_p9 = pnand %p776_p7, %p289_p8 }
   0xd   : > { %p324_p10 = scmp.lt.s32.totalorder (!%p290_p9), %s1098_s13, 1  ;;  %s321_s24 = sand.u32 (!%p290_p9), 1, %s1017_s10  }
   0xe   : > { %293 = sbr.rel (%p290_p9) target bundleno = 1294 (0x50e), region = 56  ;;  %s777_s25 = sshll.u32 (!%p290_p9), %s321_s24, 3 }
   0xf   : > { %s877_s26 = sshll.u32 (!%p290_p9), %s1098_s13, 3  ;;  %s323_s17 = scalar_lea.vmem (!%p290_p9), [#allocation2], %s777_s25 }
  0x10   : > { %s709_s29 = scalar_lea.hbm (!%p290_p9), %s1284_s9, %s877_s26  ;;  %s983_s28 = scalar_lea.hbm (!%p290_p9), %s1284_s9, 16 }
  0x11   : > { %s713_s22 = sshll.u32 (!%p290_p9), %s709_s29, 4  ;;  %s714_s22 = int_to_ptr.hbm [resolvable:$true] %s713_s22 }
  0x12   : > { %s977_s23 = sshra.s32 (!%p290_p9), %s714_s22, 4  ;;  %s978_s23 = int_to_ptr.hbm [resolvable:$true] %s977_s23 }
  0x13   : > { %v329_v0 = vld [vmem:[%s1276_s1 + $0x8] sm:$0xff]  ;;  %v328_v1 = vld [vmem:[%s1276_s1] sm:$0xff]  ;;  %v887_v2 = vld [vmem:[%s1278_s3 + $0x38] sm:$0xff]  ;;  %s325_s27 = scalar_select %p324_p10, %s1098_s13, 1  ;;  %vm386_vm0 = vcmask 130048  }
  0x14   : > { %404 = vmatpush.msra.mxu0 %v329_v0  ;;  %463 = vmatpush.bf16.msra.mxu1 %v887_v2  ;;  %v886_v3 = vld [vmem:[%s1278_s3 + $0x30] sm:$0xff]  ;;  %v885_v5 = vld [vmem:[%s1278_s3 + $0x28] sm:$0xff]  ;;  %v884_v6 = vld [vmem:[%s1278_s3 + $0x20] sm:$0xff]  ;;  %s699_s13 = scalar_lea.sflag [#allocation3], %s321_s24  ;;  %s979_s26 = scalar_lea.hbm %s978_s23, 8 }
  0x15   : > { %546 = vmatpush.bf16.msra.mxu3 %v887_v2  ;;  %s778_s14 = sshll.u32 %s325_s27, 3  ;;  %v883_v7 = vld [vmem:[%s1278_s3 + $0x18] sm:$0xff]  ;;  %v882_v8 = vld [vmem:[%s1278_s3 + $0x10] sm:$0xff]  ;;  %v881_v9 = vld [vmem:[%s1278_s3 + $0x8] sm:$0xff]  ;;  %p980_p11 = scmp.ne.s32.totalorder %s978_s23, %s979_s26 }
  0x16   : > { %405 = vmatpush.msra.mxu0 %v328_v1  ;;  %s327_s21 = scalar_lea.vmem %s1275_s0, %s778_s14  ;;  %v880_v10 = vld [vmem:[%s1278_s3] sm:$0xff]  ;;  %v895_v11 = vld [vmem:[%s1280_s5 + $0x38] sm:$0xff]  ;;  %v894_v12 = vld [vmem:[%s1280_s5 + $0x30] sm:$0xff]  ;;  %p984_p0 = scmp.lt.s32.totalorder %s978_s23, %s1284_s9 }
  0x17   : > { %v1142_v4 = vld [vmem:[%s327_s21] sm:$0xff]  ;;  %529 = vmatpush.bf16.msra.mxu2 %v895_v11  ;;  %v893_v13 = vld [vmem:[%s1280_s5 + $0x28] sm:$0xff]  ;;  %v891_v15 = vld [vmem:[%s1280_s5 + $0x18] sm:$0xff]  ;;  %s711_s21 = sshll.u32 %s323_s17, 4  ;;  %p981_p12 = pnand %p980_p11, %p1115_p5  ;;  %s712_s21 = int_to_ptr.vmem [resolvable:$true] %s711_s21 }
  0x18   : > { %464 = vmatpush.bf16.msra.mxu1 %v886_v3  ;;  %779 = vmatmul.msk.f32.vlgmr.msra.gmra.mxu0 %vm386_vm0, %v1142_v4  ;;  %v892_v14 = vld [vmem:[%s1280_s5 + $0x20] sm:$0xff]  ;;  %v890_v21 = vld [vmem:[%s1280_s5 + $0x10] sm:$0xff]  ;;  %v889_v22 = vld [vmem:[%s1280_s5 + $0x8] sm:$0xff]  ;;  %p985_p1 = scmp.lt.s32.totalorder %s983_s28, %s979_s26 }
  0x19   : > { %547 = vmatpush.bf16.msra.mxu3 %v886_v3  ;;  %561 = vmatpush.bf16.msrb.mxu0 %v895_v11  ;;  %v943_v16 = vld [vmem:[%s1277_s2] ss:$0 sm:$0xff]  ;;  %v903_v55 = vld [vmem:[%s1282_s7 + $0x38] sm:$0xff]  ;;  %v902_v56 = vld [vmem:[%s1282_s7 + $0x30] sm:$0xff]  ;;  %p982_p13 = pneg %p981_p12 }
  0x1a   : > { %v888_v23 = vld [vmem:[%s1280_s5] sm:$0xff]  ;;  %v901_v57 = vld [vmem:[%s1282_s7 + $0x28] sm:$0xff]  ;;  %v899_v59 = vld [vmem:[%s1282_s7 + $0x18] sm:$0xff]  ;;  %p986_p2 = por %p985_p1, %p984_p0 }
  0x1b   : > { %530 = vmatpush.bf16.msra.mxu2 %v894_v12  ;;  %v1197_v24 = vld [vmem:[%s1279_s4] ss:$0 sm:$0xff] }
  0x1c   : > { %465 = vmatpush.bf16.msra.mxu1 %v885_v5  ;;  %v945_v30 = vld [vmem:[%s1281_s6] ss:$0 sm:$0xff]  ;;  %p987_p3 = pnand %p986_p2, %p982_p13 }
  0x1d   : > { %548 = vmatpush.bf16.msra.mxu3 %v885_v5  ;;  %562 = vmatpush.bf16.msrb.mxu0 %v894_v12  ;;  %v900_v58 = vld [vmem:[%s1282_s7 + $0x20] sm:$0xff] }
  0x1f   : > { %531 = vmatpush.bf16.msra.mxu2 %v893_v13 }
  0x20   : > { %466 = vmatpush.bf16.msra.mxu1 %v884_v6 }
  0x21   : > { %549 = vmatpush.bf16.msra.mxu3 %v884_v6  ;;  %563 = vmatpush.bf16.msrb.mxu0 %v893_v13 }
  0x23   : > { %532 = vmatpush.bf16.msra.mxu2 %v892_v14 }
  0x24   : > { %467 = vmatpush.bf16.msra.mxu1 %v883_v7 }
  0x25   : > { %550 = vmatpush.bf16.msra.mxu3 %v883_v7  ;;  %564 = vmatpush.bf16.msrb.mxu0 %v892_v14 }
  0x27   : > { %533 = vmatpush.bf16.msra.mxu2 %v891_v15 }
  0x28   : > { %468 = vmatpush.bf16.msra.mxu1 %v882_v8 }
  0x29   : > { %551 = vmatpush.bf16.msra.mxu3 %v882_v8  ;;  %565 = vmatpush.bf16.msrb.mxu0 %v891_v15 }
  0x2b   : > { %534 = vmatpush.bf16.msra.mxu2 %v890_v21 }
  0x2c   : > { %469 = vmatpush.bf16.msra.mxu1 %v881_v9 }
  0x2d   : > { %552 = vmatpush.bf16.msra.mxu3 %v881_v9  ;;  %566 = vmatpush.bf16.msrb.mxu0 %v890_v21 }
  0x2f   : > { %535 = vmatpush.bf16.msra.mxu2 %v889_v22 }
  0x30   : > { %470 = vmatpush.bf16.msra.mxu1 %v880_v10 }
  0x31   : > { %553 = vmatpush.bf16.msra.mxu3 %v880_v10  ;;  %567 = vmatpush.bf16.msrb.mxu0 %v889_v22 }
  0x33   : > { %536 = vmatpush.bf16.msra.mxu2 %v888_v23 }
  0x34   : > { %578 = vmatpush.bf16.msrb.mxu1 %v887_v2 }
  0x35   : > { %611 = vmatpush.bf16.msrb.mxu3 %v887_v2  ;;  %568 = vmatpush.bf16.msrb.mxu0 %v888_v23 }
  0x37   : > { %593 = vmatpush.bf16.msrb.mxu2 %v895_v11 }
  0x38   : > { %579 = vmatpush.bf16.msrb.mxu1 %v886_v3 }
  0x39   : > { %612 = vmatpush.bf16.msrb.mxu3 %v886_v3  ;;  %678 = vmatpush.bf16.msra.mxu0 %v903_v55 }
  0x3b   : > { %594 = vmatpush.bf16.msrb.mxu2 %v894_v12 }
  0x3c   : > { %580 = vmatpush.bf16.msrb.mxu1 %v885_v5 }
  0x3d   : > { %613 = vmatpush.bf16.msrb.mxu3 %v885_v5  ;;  %679 = vmatpush.bf16.msra.mxu0 %v902_v56  ;;  %v898_v5 = vld [vmem:[%s1282_s7 + $0x10] sm:$0xff] }
  0x3f   : > { %595 = vmatpush.bf16.msrb.mxu2 %v893_v13 }
  0x40   : > { %581 = vmatpush.bf16.msrb.mxu1 %v884_v6 }
  0x41   : > { %614 = vmatpush.bf16.msrb.mxu3 %v884_v6  ;;  %680 = vmatpush.bf16.msra.mxu0 %v901_v57  ;;  %v897_v6 = vld [vmem:[%s1282_s7 + $0x8] sm:$0xff] }
  0x43   : > { %596 = vmatpush.bf16.msrb.mxu2 %v892_v14 }
  0x44   : > { %582 = vmatpush.bf16.msrb.mxu1 %v883_v7 }
  0x45   : > { %615 = vmatpush.bf16.msrb.mxu3 %v883_v7  ;;  %681 = vmatpush.bf16.msra.mxu0 %v900_v58  ;;  %v896_v7 = vld [vmem:[%s1282_s7] sm:$0xff] }
  0x47   : > { %597 = vmatpush.bf16.msrb.mxu2 %v891_v15 }
  0x48   : > { %583 = vmatpush.bf16.msrb.mxu1 %v882_v8 }
  0x49   : > { %616 = vmatpush.bf16.msrb.mxu3 %v882_v8  ;;  %682 = vmatpush.bf16.msra.mxu0 %v899_v59 }
  0x4b   : > { %598 = vmatpush.bf16.msrb.mxu2 %v890_v21 }
  0x4c   : > { %584 = vmatpush.bf16.msrb.mxu1 %v881_v9 }
  0x4d   : > { %617 = vmatpush.bf16.msrb.mxu3 %v881_v9  ;;  %683 = vmatpush.bf16.msra.mxu0 %v898_v5 }
  0x4f   : > { %599 = vmatpush.bf16.msrb.mxu2 %v889_v22 }
  0x50   : > { %585 = vmatpush.bf16.msrb.mxu1 %v880_v10 }
  0x51   : > { %618 = vmatpush.bf16.msrb.mxu3 %v880_v10  ;;  %684 = vmatpush.bf16.msra.mxu0 %v897_v6 }
  0x53   : > { %600 = vmatpush.bf16.msrb.mxu2 %v888_v23 }
  0x55   : > { %685 = vmatpush.bf16.msra.mxu0 %v896_v7 }
  0x95   : > { %v407_v17 = vpop.f32.mrf.mxu0 }
  0x96   : > { %v1182_v18 = vadd.f32 %v943_v16, %v407_v17 }
  0x98   : > { %947 = vtanh.f32 %v1182_v18 }
  0x9e   : > { %v948_v19 = vpop.eup %947 }
  0x9f   : > { %v411_v20 = vpack.c.bf16 %v948_v19, %v948_v19  ;;  %v946_v19 = vld [vmem:[%s1283_s8] ss:$0 sm:$0xff] }
  0xa1   : > { %471 = vmatmul.bf16.vlgmr.msra.gmra.mxu1 %v411_v20 }
 0x11e   : > { %v472_v25 = vpop.f32.mrf.mxu1 }
 0x11f   : > { %v473_v26 = vadd.f32 %v1197_v24, %v472_v25 }
 0x121   : > { %949 = vtanh.f32 %v473_v26 }
 0x126   : > { %v474_v27 = vpop.f32.mrf.mxu1 }
 0x127   : > { %v1200_v28 = vpop.eup %949 }
 0x128   : > { %v477_v29 = vpack.c.bf16 %v1200_v28, %v1200_v28 }
 0x12a   : > { %537 = vmatmul.bf16.vlgmr.msra.gmra.mxu2 %v477_v29 }
 0x1ad   : > { %v538_v31 = vpop.f32.mrf.mxu2 }
 0x1ae   : > { %v539_v32 = vadd.f32 %v945_v30, %v538_v31 }
 0x1b0   : > { %v542_v33 = vmul.f32 0.33333334, %v539_v32 }
 0x1b2   : > { %v543_v34 = vadd.f32 %v542_v33, %v1182_v18 }
 0x1b4   : > { %951 = vtanh.f32 %v543_v34 }
 0x1b5   : > { %v540_v35 = vpop.f32.mrf.mxu2 }
 0x1ba   : > { %v952_v36 = vpop.eup %951 }
 0x1bb   : > { %v545_v37 = vpack.c.bf16 %v952_v36, %v952_v36 }
 0x1bd   : > { %554 = vmatmul.bf16.vlgmr.msra.gmra.mxu3 %v545_v37 }
 0x240   : > { %v555_v38 = vpop.f32.mrf.mxu3 }
 0x241   : > { %v556_v39 = vadd.f32 %v1197_v24, %v555_v38 }
 0x243   : > { %953 = vtanh.f32 %v556_v39 }
 0x248   : > { %v557_v40 = vpop.f32.mrf.mxu3 }
 0x249   : > { %v954_v41 = vpop.eup %953 }
 0x24a   : > { %v560_v42 = vpack.c.bf16 %v954_v41, %v954_v41 }
 0x24c   : > { %569 = vmatmul.bf16.vlgmr.msrb.gmra.mxu0 %v560_v42 }
 0x2c9   : > { %v570_v43 = vpop.f32.mrf.mxu0 }
 0x2ca   : > { %v571_v44 = vadd.f32 %v945_v30, %v570_v43 }
 0x2cc   : > { %v574_v45 = vadd.f32 %v571_v44, %v1182_v18  ;;  %v606_v61 = vsub.f32 %v539_v32, %v571_v44 }
 0x2ce   : > { %v575_v46 = vsub.f32 %v574_v45, %v542_v33 }
 0x2d0   : > { %955 = vtanh.f32 %v575_v46 }
 0x2d1   : > { %v572_v47 = vpop.f32.mrf.mxu0 }
 0x2d6   : > { %v956_v48 = vpop.eup %955 }
 0x2d7   : > { %v577_v49 = vpack.c.bf16 %v956_v48, %v956_v48 }
 0x2d9   : > { %586 = vmatmul.bf16.vlgmr.msrb.gmra.mxu1 %v577_v49 }
 0x356   : > { %v587_v50 = vpop.f32.mrf.mxu1 }
 0x357   : > { %v588_v51 = vadd.f32 %v1197_v24, %v587_v50 }
 0x359   : > { %957 = vtanh.f32 %v588_v51 }
 0x35e   : > { %v589_v52 = vpop.f32.mrf.mxu1 }
 0x35f   : > { %v958_v53 = vpop.eup %957 }
 0x360   : > { %v592_v54 = vpack.c.bf16 %v958_v53, %v958_v53  ;;  %v625_v8 = vadd.f32 %v958_v53, %v954_v41 }
 0x362   : > { %601 = vmatmul.bf16.vlgmr.msrb.gmra.mxu2 %v592_v54  ;;  %v626_v11 = vmul.f32 3.0, %v625_v8 }
 0x364   : > { %v627_v13 = vadd.f32 %v1200_v28, %v626_v11 }
 0x3e5   : > { %v602_v60 = vpop.f32.mrf.mxu2 }
 0x3e6   : > { %v603_v62 = vadd.f32 %v945_v30, %v602_v60 }
 0x3e8   : > { %v607_v63 = vadd.f32 %v606_v61, %v603_v62 }
 0x3ea   : > { %v608_v0 = vadd.f32 %v607_v63, %v1182_v18 }
 0x3ec   : > { %959 = vtanh.f32 %v608_v0 }
 0x3ed   : > { %v604_v1 = vpop.f32.mrf.mxu2 }
 0x3f2   : > { %v960_v2 = vpop.eup %959 }
 0x3f3   : > { %v610_v3 = vpack.c.bf16 %v960_v2, %v960_v2 }
 0x3f5   : > { %619 = vmatmul.bf16.vlgmr.msrb.gmra.mxu3 %v610_v3 }
 0x478   : > { %v620_v9 = vpop.f32.mrf.mxu3 }
 0x479   : > { %v621_v10 = vadd.f32 %v1197_v24, %v620_v9 }
 0x47b   : > { %961 = vtanh.f32 %v621_v10 }
 0x480   : > { %v622_v12 = vpop.f32.mrf.mxu3 }
 0x481   : > { %v962_v14 = vpop.eup %961 }
 0x482   : > { %v628_v15 = vadd.f32 %v962_v14, %v627_v13 }
 0x484   : > { %v629_v16 = vpack.c.bf16 %v628_v15, %v628_v15 }
 0x486   : > { %686 = vmatmul.bf16.vlgmr.msra.gmra.mxu0 %v629_v16 }
 0x503   : > { %v687_v17 = vpop.f32.mrf.mxu0 }
 0x504   : > { %v691_v18 = vmul.f32 0.125, %v687_v17 }
 0x506   : > { %v692_v20 = vadd.f32 %v691_v18, %v1142_v4 }
 0x508   : > { %v696_v21 = vadd.f32 %v946_v19, %v692_v20 }
 0x50a   : > { %697 = vst.msk [vmem:[%s323_s17] sm:$0xff] %vm386_vm0, %v696_v21 }
 0x50b   : > { %v689_v22 = vpop.f32.mrf.mxu0 }
 0x50c   : > { %990 = shalt.err (!%p987_p3)
}
 0x50d   : > { %904 = dma.vmem_to_hbm [thread:$0]  (%p1115_p5), %s712_s21, 128, %s714_s22, %s699_s13  }
 0x50e PF: > { %p910_p4 = scmp.ge.s32.totalorder %s1025_s12, 2  ;;  %s725_s24 = sand.u32 1, %s1013_s30  }
 0x50f   : > { %s726_s16 = scalar_lea.sflag [#allocation3], %s725_s24 }
 0x510   : > { %p907_p7 = pnand %p910_p4, %p1119_p6 }
 0x512   : > { %p908_p8 = pneg %p907_p7 }
 0x514   : > { %1008 = dma.done.wait (%p908_p8), %s726_s16, 128  }
 0x515   : > { %1010 = vsyncadd (%p908_p8), %s726_s16, 4294967168  ;;  %p19_p9 = scmp.ge.s32.totalorder %s1102_s15, 4   ;;  %s1287_s30 = smov %s1017_s10 }
 0x516   : > { %s1288_s10 = smov %s1021_s11  ;;  %s1289_s11 = smov %s1113_s18 }
 0x517   : > { %s1290_s12 = smov %s1102_s15  ;;  %21 = sbr.rel (!%p19_p9) target bundleno = 3 (0x3), region = 91 }
 0x51c   :  { %732 = vsyncpa [#allocation3], 1 }
 0x51d   :  { %734 = vsyncpa [#allocation3 + $0x1], 1 }

</bundles_post_ra>
